<compile_context>
chip_gen: v5e
topology: v5e:2x2
jax: 0.10.0
libtpu: 0.0.40
codegen_flags: <defaults>
</compile_context>

<pallas_src>
import jax
import jax.numpy as jnp
from jax.experimental import pallas as pl
from jax.experimental.pallas import tpu as pltpu


def attn_kernel(x_ref, w_ref, o_ref):
    # x_ref: (TB, S, H)  batch block, native dtype
    # w_ref: (1, H)      attention weight row (same dtype as x), resident
    # o_ref: (TB, H)     lane-dense 2D output block
    x = x_ref[...]                                           # (TB, S, H)
    w = w_ref[...]                                           # (1, H)

    # scores[b, s] = sum_h x[b, s, h] * w[h]
    # (VPU multiply in x's dtype + lane reduce accumulated in f32)
    s = jnp.sum((x * w).astype(jnp.float32), axis=-1)        # (TB, S) f32

    # relu then numerically-stable softmax numerator over the sequence axis
    s = jnp.maximum(s, 0.0)
    m = jnp.max(s, axis=-1, keepdims=True)                   # (TB, 1)
    e = jnp.exp(s - m)                                       # (TB, S) f32 (EUP)
    l = jnp.sum(e, axis=-1, keepdims=True)                   # (TB, 1)

    # Weighted sum over S with UNNORMALIZED weights on the VPU, f32 accumulate.
    # (bf16 x promotes to f32 in the product; f32 x is exact.)
    acc = jnp.sum(x * e[:, :, None], axis=1)                 # (TB, H) f32

    # Exact normalization after the contraction, then final cast.
    o_ref[...] = (acc / l).astype(o_ref.dtype)               # (TB, H)


def _round_up(v, m):
    return ((v + m - 1) // m) * m


def _vmem_capacity_bytes():
    """Best-effort VMEM capacity query; conservative (v7x-sized) fallback."""
    try:
        return int(pltpu.get_tpu_info().vmem_capacity_bytes)
    except Exception:
        return 64 * 1024 * 1024


def attn_forward(x, w, *, block_b=None, block_target_bytes=None,
                 vmem_limit_bytes=None):
    """x: (B, S, H), w: (H, 1) -> (B, H)."""
    B, S, H = x.shape
    # (H, 1) -> (1, H) reshape + dtype match in the wrapper (free), so the
    # kernel sees a lane-friendly weight row.
    w_row = w.reshape(1, H).astype(x.dtype)

    itemsize = x.dtype.itemsize

    # Per-generation defaults (VMEM capacity is per TensorCore).
    cap = _vmem_capacity_bytes()
    if cap >= 128 * 1024 * 1024:            # v5e / v6e: 128 MiB VMEM
        if vmem_limit_bytes is None:
            vmem_limit_bytes = 96 * 1024 * 1024
        if block_target_bytes is None:
            block_target_bytes = 20 * 1024 * 1024
    else:                                   # v7x (64 MiB per TC) or unknown
        if vmem_limit_bytes is None:
            vmem_limit_bytes = 32 * 1024 * 1024
        if block_target_bytes is None:
            block_target_bytes = 5 * 1024 * 1024

    if block_b is None:
        # Physical footprint of one batch row inside the (TB, S, H) block,
        # accounting for (sublane, 128-lane) tiling padding of the last 2 dims.
        sublane_tile = max(1, 32 // itemsize)          # 8 f32, 16 bf16, 32 i8
        padded_h = _round_up(H, 128)
        padded_s = _round_up(S, sublane_tile)
        per_batch_bytes = padded_s * padded_h * itemsize
        block_b = max(1, min(B, block_target_bytes // max(1, per_batch_bytes)))

    # Partial last block is handled by Pallas (output stores masked), so the
    # steady-state block stays at the VMEM target regardless of B.
    num_blocks = pl.cdiv(B, block_b)

    return pl.pallas_call(
        attn_kernel,
        out_shape=jax.ShapeDtypeStruct((B, H), x.dtype),
        grid=(num_blocks,),
        in_specs=[
            pl.BlockSpec((block_b, S, H), lambda b: (b, 0, 0)),
            pl.BlockSpec((1, H), lambda b: (0, 0)),    # weight stays resident
        ],
        out_specs=pl.BlockSpec((block_b, H), lambda b: (b, 0)),
        compiler_params=pltpu.CompilerParams(
            dimension_semantics=("parallel",),          # batch axis -> megacore
            vmem_limit_bytes=vmem_limit_bytes,
        ),
    )(x, w_row)


def attn_reference(x, w):
    """Pure-JAX reference mirroring the PyTorch forward."""
    scores = jnp.einsum("bsh,ho->bso", x, w)[..., 0]          # (B, S)
    attn = jax.nn.softmax(jax.nn.relu(scores), axis=-1)       # (B, S)
    weighted = x * attn[..., None]                            # (B, S, H)
    return jnp.sum(weighted, axis=1)                          # (B, H)


if __name__ == "__main__":
    batch, seq, hidden = 2, 8, 32

    key = jax.random.PRNGKey(0)
    kx, kw = jax.random.split(key)

    # Deterministic parameter init: uniform(-1/sqrt(H), 1/sqrt(H)), shape (H, 1)
    stdv = 1.0 / jnp.sqrt(jnp.float32(hidden))
    w = jax.random.uniform(kw, (hidden, 1), jnp.float32, minval=-stdv, maxval=stdv)

    x = jax.random.normal(kx, (batch, seq, hidden), jnp.float32)

    out = jax.block_until_ready(attn_forward(x, w))
    ref = attn_reference(x, w)

    assert out.shape == (batch, hidden)
    # Exact softmax normalization (no approx reciprocal) -> tight tolerance.
    assert jnp.allclose(out, ref, atol=1e-5, rtol=1e-5), float(jnp.max(jnp.abs(out - ref)))

    print("KERNEL_OK")
</pallas_src>

<mosaic_0001>
module attributes {stable_mosaic.version = 11 : i64} {
  func.func @attn_kernel(%arg0: i32, %arg1: memref<2x8x32xf32, #tpu.memory_space<vmem>>, %arg2: memref<1x32xf32, #tpu.memory_space<vmem>>, %arg3: memref<2x32xf32, #tpu.memory_space<vmem>>) attributes {dimension_semantics = [#tpu.dimension_semantics<parallel>], iteration_bounds = array<i64: 1>, scalar_prefetch = 0 : i64, scratch_operands = 0 : i64, tpu.core_type = #tpu.core_type<tc>, window_params = [{transform_indices = @transform_0, window_bounds = array<i64: 2, 8, 32>}, {pipeline_mode = #tpu.pipeline_mode<synchronous>, transform_indices = @transform_1, window_bounds = array<i64: 1, 32>}, {transform_indices = @transform_2, window_bounds = array<i64: 2, 32>}]} {
    %c0 = arith.constant 0 : index
    %c0_0 = arith.constant 0 : index
    %c0_1 = arith.constant 0 : index
    %0 = vector.load %arg1[%c0, %c0_0, %c0_1] : memref<2x8x32xf32, #tpu.memory_space<vmem>>, vector<2x8x32xf32>
    %c0_2 = arith.constant 0 : index
    %c0_3 = arith.constant 0 : index
    %1 = vector.load %arg2[%c0_2, %c0_3] : memref<1x32xf32, #tpu.memory_space<vmem>>, vector<1x32xf32>
    %2 = vector.shape_cast %1 : vector<1x32xf32> to vector<1x1x32xf32>
    %3 = vector.broadcast %2 : vector<1x1x32xf32> to vector<2x8x32xf32>
    %4 = arith.mulf %0, %3 : vector<2x8x32xf32>
    %cst = arith.constant dense<0.000000e+00> : vector<2x8xf32>
    %5 = vector.multi_reduction <add>, %4, %cst [2] : vector<2x8x32xf32> to vector<2x8xf32>
    %cst_4 = arith.constant 0.000000e+00 : f32
    %6 = vector.broadcast %cst_4 : f32 to vector<2x8xf32>
    %7 = arith.maximumf %5, %6 : vector<2x8xf32>
    %cst_5 = arith.constant dense<0xFF800000> : vector<2xf32>
    %8 = vector.multi_reduction <maximumf>, %7, %cst_5 [1] : vector<2x8xf32> to vector<2xf32>
    %9 = vector.shape_cast %8 : vector<2xf32> to vector<2x1xf32>
    %10 = vector.broadcast %9 : vector<2x1xf32> to vector<2x8xf32>
    %11 = arith.subf %7, %10 : vector<2x8xf32>
    %12 = math.exp %11 : vector<2x8xf32>
    %cst_6 = arith.constant dense<0.000000e+00> : vector<2xf32>
    %13 = vector.multi_reduction <add>, %12, %cst_6 [1] : vector<2x8xf32> to vector<2xf32>
    %14 = vector.shape_cast %13 : vector<2xf32> to vector<2x1xf32>
    %15 = vector.shape_cast %12 : vector<2x8xf32> to vector<2x8x1xf32>
    %16 = vector.broadcast %15 : vector<2x8x1xf32> to vector<2x8x32xf32>
    %17 = arith.mulf %0, %16 : vector<2x8x32xf32>
    %cst_7 = arith.constant dense<0.000000e+00> : vector<2x32xf32>
    %18 = vector.multi_reduction <add>, %17, %cst_7 [1] : vector<2x8x32xf32> to vector<2x32xf32>
    %19 = vector.broadcast %14 : vector<2x1xf32> to vector<2x32xf32>
    %20 = arith.divf %18, %19 : vector<2x32xf32>
    %c0_8 = arith.constant 0 : index
    %c0_9 = arith.constant 0 : index
    %21 = vector.load %arg3[%c0_8, %c0_9] : memref<2x32xf32, #tpu.memory_space<vmem>>, vector<2x32xf32>
    tpu.vector_store %arg3[%c0_8, %c0_9], %20 {strides = array<i32>} : memref<2x32xf32, #tpu.memory_space<vmem>>, vector<2x32xf32>,
    return
  }
  func.func @transform_0(%arg0: i32) -> (i32, i32, i32) {
    %c0_i32 = arith.constant 0 : i32
    %c0_i32_0 = arith.constant 0 : i32
    %c0_i32_1 = arith.constant 0 : i32
    return %arg0, %c0_i32, %c0_i32_0 : i32, i32, i32
  }
  func.func @transform_1(%arg0: i32) -> (i32, i32) {
    %c0_i32 = arith.constant 0 : i32
    %c0_i32_0 = arith.constant 0 : i32
    %c0_i32_1 = arith.constant 0 : i32
    return %c0_i32, %c0_i32_0 : i32, i32
  }
  func.func @transform_2(%arg0: i32) -> (i32, i32) {
    %c0_i32 = arith.constant 0 : i32
    %c0_i32_0 = arith.constant 0 : i32
    return %arg0, %c0_i32 : i32, i32
  }
}

</mosaic_0001>

<bundles_post_ra>
// kernel: tpu_custom_call.1
= control target key start
LH: loop header
LB: loop body
LE: loop exit
PB: predicated region body
PF: predicated region fallthrough
CT: control target
= control target key end

     0   :  { %7 = vsyncpa [#allocation3], 0  ;;  %s310_s0 = inlined_call_operand.hbm [shape: f32[2,8,32], index: 0, kind: input, shape index: {}]   ;;  %s311_s1 = inlined_call_operand.hbm [shape: f32[1,32], index: 1, kind: input, shape index: {}]   ;;  %s312_s2 = inlined_call_operand.hbm [shape: f32[2,32], index: 2, kind: output, shape index: {}]  }
   0x1   :  { %8 = vsyncpa [#allocation6], 0 }
   0x2   :  { %9 = vsyncpa [#allocation4], 0  ;;  %s14_s11 = sshll.u32 %s310_s0, 4  ;;  %s271_s12 = smov [#allocation2]   ;;  %s15_s11 = int_to_ptr.hbm [resolvable:$true] %s14_s11 }
   0x3   :  { %s16_s13 = sshll.u32 %s271_s12, 4  ;;  %s28_s16 = sshll.u32 %s311_s1, 4  ;;  %s17_s13 = int_to_ptr.vmem [resolvable:$true] %s16_s13  ;;  %s29_s16 = int_to_ptr.hbm [resolvable:$true] %s28_s16 }
   0x4   :  { %s272_s17 = smov 128   ;;  %s273_s18 = smov 8  }
   0x5   :  { %22 = dma.hbm_to_vmem [thread:$0]  %s15_s11, 256, %s17_s13, [#allocation3], %s272_s17, %s272_s17, %s273_s18  }
   0x6   :  { %s274_s19 = smov [#allocation5]  }
   0x7   :  { %s30_s20 = sshll.u32 %s274_s19, 4  ;;  %s31_s20 = int_to_ptr.vmem [resolvable:$true] %s30_s20 }
   0x8   :  { %33 = dma.hbm_to_vmem [thread:$0]  %s29_s16, 16, %s31_s20, [#allocation6]  }
   0x9   :  { %265 = dma.done.wait [#allocation3], 256  }
   0xa   :  { %266 = vsyncadd [#allocation3], 4294967040 }
   0xb   :  { %267 = dma.done.wait [#allocation6], 16  }
   0xc   :  { %268 = vsyncadd [#allocation6], 4294967280  ;;  %v42_v0 = vld [vmem:[#allocation2] sm:$0xff]  ;;  %v184_v1 = vld [vmem:[#allocation5] ss:$0 sm:$0xff]  ;;  %vm50_vm0 = vcmask 261120   ;;  %v61_v8 = vlaneseq }
   0xd   :  { %v48_v2 = vmul.f32 %v184_v1, %v42_v0  ;;  %v43_v3 = vld [vmem:[#allocation2 + $0x8] sm:$0xff]  ;;  %vm65_vm1 = vcmask 1041409   ;;  %vm68_vm2 = vcmask 58368   ;;  %v275_v17 = vmov 0   ;;  %s276_s0 = smov [#allocation7]   ;;  %s164_s23 = sshll.u32 %s312_s2, 4  ;;  %s165_s23 = int_to_ptr.hbm [resolvable:$true] %s164_s23 }
   0xe   :  { %v49_v5 = vmul.f32 %v184_v1, %v43_v3  ;;  %v62_v9 = vand.u32 127, %v61_v8  ;;  %182 = vset.pattern.permute.xlu2 %v275_v17  ;;  %181 = vset.pattern.permute.xlu1 %v275_v17  ;;  %s162_s1 = sshll.u32 %s276_s0, 4  ;;  %vm155_vm11 = vcmask 254976   ;;  %s163_s1 = int_to_ptr.vmem [resolvable:$true] %s162_s1 }
   0xf   :  { %v51_v4 = vsel %vm50_vm0, %v48_v2, 0.0  ;;  %183 = vset.pattern.permute.xlu0 %v275_v17 }
  0x10   :  { %52 = vadd.xlane.f32.xlu0 %v51_v4  ;;  %v54_v6 = vsel %vm50_vm0, %v49_v5, 0.0 }
  0x18   :  { %55 = vadd.xlane.f32.xlu0 %v54_v6 }
  0x83   :  { %v53_v7 = vpop.xlane.xlu0 %52 }
  0x84   :  { %v57_v10 = vmax.f32 %v53_v7, 0.0 }
  0x86   :  { %v63_v13 = vperm.slane %v57_v10, %v62_v9 }
  0x8b   :  { %v56_v11 = vpop.xlane.xlu0 %55 }
  0x8c   :  { %v58_v12 = vmax.f32 %v56_v11, 0.0 }
  0x8e   :  { %v64_v14 = vperm.slane %v58_v12, %v62_v9 }
  0x90   :  { %v66_v15 = vsel %vm65_vm1, %v64_v14, %v63_v13 }
  0x91   :  { %v69_v16 = vsel %vm68_vm2, %v66_v15, -inf }
  0x92   :  { %70 = vmax.xlane.f32.xlu1 %v69_v16 }
 0x105   :  { %v71_v18 = vpop.xlane.xlu1 %70 }
 0x106   :  { %v73_v19 = vperm.slane %v71_v18, 0  ;;  %v74_v20 = vperm.slane %v71_v18, 1 }
 0x108   :  { %v77_v21 = vsub.f32 %v57_v10, %v73_v19  ;;  %v78_v22 = vsub.f32 %v58_v12, %v74_v20 }
 0x10a   :  { %v79_v23 = vmul.f32 1.442695, %v77_v21  ;;  %v81_v24 = vmul.f32 1.442695, %v78_v22 }
 0x10c   :  { %185 = vpow2.f32 %v79_v23 }
 0x10d   :  { %187 = vpow2.f32 %v81_v24 }
 0x112   :  { %v186_v25 = vpop.eup %185 }
 0x113   :  { %v188_v26 = vpop.eup %187  ;;  %86 = vperm.xlu1 %181, %v186_v25  }
 0x114   :  { %89 = vperm.xlu2 %182, %v188_v26  }
 0x16e   :  { %v90_v27 = vpop.permute.xlu2 %89 }
 0x16f   :  { %v92_v29 = vperm.slane %v90_v27, %v62_v9  ;;  %v101_v33 = vmul.f32 %v90_v27, %v43_v3 }
 0x171   :  { %v109_v34 = vsel %vm50_vm0, %v101_v33, 0.0 }
 0x172   :  { %v110_v36 = vrot.slane %v109_v34, 4 }
 0x174   :  { %v111_v38 = vadd.f32 %v110_v36, %v109_v34 }
 0x176   :  { %v112_v42 = vrot.slane %v111_v38, 2 }
 0x178   :  { %v113_v45 = vadd.f32 %v112_v42, %v111_v38 }
 0x17a   :  { %v114_v51 = vrot.slane %v113_v45, 1 }
 0x17c   :  { %v115_v2 = vadd.f32 %v114_v51, %v113_v45 }
 0x185   :  { %v87_v28 = vpop.permute.xlu1 %86 }
 0x186   :  { %v91_v30 = vperm.slane %v87_v28, %v62_v9  ;;  %v100_v35 = vmul.f32 %v87_v28, %v42_v0 }
 0x188   :  { %v93_v31 = vsel %vm65_vm1, %v92_v29, %v91_v30  ;;  %v102_v37 = vsel %vm50_vm0, %v100_v35, 0.0 }
 0x189   :  { %v95_v32 = vsel %vm68_vm2, %v93_v31, 0.0  ;;  %v103_v39 = vrot.slane %v102_v37, 4 }
 0x18a   :  { %96 = vadd.xlane.f32.xlu2 %v95_v32 }
 0x18b   :  { %v104_v43 = vadd.f32 %v103_v39, %v102_v37 }
 0x18d   :  { %v105_v46 = vrot.slane %v104_v43, 2 }
 0x18f   :  { %v106_v52 = vadd.f32 %v105_v46, %v104_v43 }
 0x191   :  { %v107_v61 = vrot.slane %v106_v52, 1 }
 0x193   :  { %v108_v6 = vadd.f32 %v107_v61, %v106_v52 }
 0x1fd   :  { %v97_v40 = vpop.xlane.xlu2 %96 }
 0x1fe   :  { %v117_v41 = vrot.slane %v97_v40, 1  ;;  %189 = vrcp.f32 %v97_v40  ;;  %vm125_vm4 = vweird.f32 %v97_v40  ;;  %v129_v55 = vand.u32 2147483647, %v97_v40 }
 0x1ff   :  { %v131_v56 = vand.u32 2147483648, %v97_v40 }
 0x200   :  { %191 = vrcp.f32 %v117_v41  ;;  %v146_v57 = vand.u32 2147483648, %v117_v41  ;;  %v144_v60 = vand.u32 2147483647, %v117_v41  ;;  %vm140_vm7 = vweird.f32 %v117_v41 }
 0x201   :  { %v132_v0 = vor.u32 1.1754944e-38, %v131_v56  ;;  %vm130_vm9 = vcmp.eq.f32.partialorder %v129_v55, 8.507059e+37 }
 0x202   :  { %v147_v1 = vor.u32 1.1754944e-38, %v146_v57  ;;  %vm145_vm10 = vcmp.eq.f32.partialorder %v144_v60, 8.507059e+37 }
 0x204   :  { %v190_v44 = vpop.eup %189 }
 0x205   :  { %v121_v47 = vmul.f32 %v190_v44, %v97_v40  ;;  %vm126_vm3 = vweird.f32 %v190_v44 }
 0x206   :  { %v192_v48 = vpop.eup %191  ;;  %vm127_vm6 = vmor %vm125_vm4, %vm126_vm3 }
 0x207   :  { %v122_v49 = vsub.f32 1.0, %v121_v47  ;;  %v136_v50 = vmul.f32 %v192_v48, %v117_v41  ;;  %vm141_vm5 = vweird.f32 %v192_v48 }
 0x208   :  { %vm142_vm8 = vmor %vm140_vm7, %vm141_vm5 }
 0x209   :  { %v123_v53 = vmul.f32 %v190_v44, %v122_v49  ;;  %v137_v54 = vsub.f32 1.0, %v136_v50 }
 0x20b   :  { %v124_v58 = vadd.f32 %v190_v44, %v123_v53  ;;  %v138_v59 = vmul.f32 %v192_v48, %v137_v54 }
 0x20d   :  { %v128_v62 = vsel %vm127_vm6, %v190_v44, %v124_v58  ;;  %v139_v63 = vadd.f32 %v192_v48, %v138_v59 }
 0x20e   :  { %v133_v4 = vsel %vm130_vm9, %v132_v0, %v128_v62 }
 0x20f   :  { %v143_v3 = vsel %vm142_vm8, %v192_v48, %v139_v63  ;;  %v134_v8 = vmul.f32 %v133_v4, %v108_v6 }
 0x210   :  { %v148_v5 = vsel %vm145_vm10, %v147_v1, %v143_v3 }
 0x211   :  { %v149_v7 = vmul.f32 %v148_v5, %v115_v2 }
 0x213   :  { %v152_v9 = vrot.slane %v149_v7, 7 }
 0x215   :  { %v153_v10 = vsel %vm65_vm1, %v152_v9, %v134_v8 }
 0x216   :  { %156 = vst.msk [vmem:[#allocation7] sm:$0x3] %vm155_vm11, %v153_v10 }
 0x217   :  { %167 = dma.vmem_to_hbm [thread:$0]  %s163_s1, 32, %s165_s23, [#allocation4]  }
 0x218   :  { %269 = dma.done.wait [#allocation4], 32  }
 0x219   :  { %270 = vsyncadd [#allocation4], 4294967264 }
 0x21a   :  { %172 = vsyncpa [#allocation3], 1 }
 0x21b   :  { %173 = vsyncpa [#allocation6], 1 }
 0x21c   :  { %174 = vsyncpa [#allocation4], 1 }

</bundles_post_ra>
